<compile_context>
chip_gen: v6e
topology: v6e:2x2x1
jax: 0.10.0
libtpu: 0.0.40
codegen_flags: <defaults>
</compile_context>

<pallas_src>
import functools

import jax
import jax.numpy as jnp
from jax import lax
from jax.experimental import pallas as pl
from jax.experimental.pallas import tpu as pltpu


def _round_up(n: int, m: int) -> int:
    return ((n + m - 1) // m) * m


def _block_spec(shape, index_map, buffers=None):
    """BlockSpec, optionally with an explicit pipeline depth (1 = resident)."""
    if buffers is not None:
        try:
            return pl.BlockSpec(shape, index_map, pipeline_mode=pl.Buffered(buffers))
        except (TypeError, AttributeError):
            # Older jax without pipeline_mode / Buffered: fall back to default (2).
            pass
    return pl.BlockSpec(shape, index_map)


def gating_kernel(x_ref, w_ref, b_ref, o_ref, acc_ref, *, precision):
    # x_ref: (TB, TK), w_ref: (TK, E_pad), b_ref: (1, E_pad)
    # o_ref: (TB, E_pad), acc_ref: (TB, E_pad) f32 scratch, resident across K.
    k = pl.program_id(1)

    @pl.when(k == 0)
    def _():
        acc_ref[...] = jnp.zeros_like(acc_ref)

    # Canonical (M, K) x (K, N) MXU contraction, f32 accumulation.
    # For very large D, pass precision=lax.Precision.HIGHEST if exact-f32 parity
    # with a float32 reference (1e-5) is required.
    acc_ref[...] += lax.dot_general(
        x_ref[...], w_ref[...],
        dimension_numbers=(((1,), (0,)), ((), ())),
        preferred_element_type=jnp.float32,
        precision=precision,
    )

    @pl.when(k == pl.num_programs(1) - 1)
    def _():
        # Broadcast bias add rides a free VPU slot; single lane-dense store.
        o_ref[...] = (acc_ref[...] + b_ref[...]).astype(o_ref.dtype)


def prepare_gating_params(weight, bias):
    """One-time parameter prep. Do this ONCE, not per forward call.

    weight: (E, D) PyTorch nn.Linear layout; bias: (E,).
    Returns (w_t, b2): (D, E_pad) transposed weight (experts lane-dense) and
    (1, E_pad) bias, both zero-padded on the expert axis.
    """
    E, D = weight.shape
    E_pad = 128 if E <= 128 else _round_up(E, 256)   # 256 = MXU width on v6e/v7x
    pad_e = E_pad - E
    w = jnp.pad(weight, ((0, pad_e), (0, 0))) if pad_e else weight
    w_t = jnp.transpose(w)                                   # (D, E_pad)
    b2 = jnp.pad(bias, (0, pad_e)).reshape(1, E_pad).astype(jnp.float32)
    return w_t, b2


@functools.partial(
    jax.jit,
    static_argnames=("num_experts", "block_b", "block_k", "vmem_budget_bytes",
                     "precision"),
)
def gating_forward(x, w_t, b2, *, num_experts, block_b=512, block_k=512,
                   vmem_budget_bytes=32 * 1024 * 1024, precision=None):
    """Pallas forward for nn.Linear(input_dim, num_experts): x @ W.T + b."""
    B, D = x.shape
    D_w, E_pad = w_t.shape
    assert D_w == D and b2.shape == (1, E_pad)

    x_bytes = jnp.dtype(x.dtype).itemsize
    w_bytes = jnp.dtype(w_t.dtype).itemsize
    o_bytes = x_bytes

    # Batch tile: a single block covering the whole batch when it fits (any B is
    # legal as a full-dim block), otherwise multiple-of-8 tiles with a ragged
    # last block (masked by Pallas) -> no HBM padding copy of x, ever.
    TB = B if B <= block_b else block_b

    def vmem_need(tb, tk, n_k):
        x_buf = 2 * tb * tk * x_bytes                           # streamed, 2-deep
        w_buf = (1 if n_k == 1 else 2) * tk * E_pad * w_bytes   # resident if n_k==1
        o_buf = 2 * tb * E_pad * o_bytes
        a_buf = tb * E_pad * 4                                  # f32 accumulator
        bias_buf = 8 * E_pad * 4
        return x_buf + w_buf + o_buf + a_buf + bias_buf

    # Keep the full weight resident (fetched from HBM exactly once) whenever the
    # full-D working set fits the budget; otherwise stream K chunks with the
    # resident accumulator (large D / v7x 64 MiB VMEM).
    if vmem_need(TB, D, 1) <= vmem_budget_bytes:
        TK, n_k = D, 1
    else:
        TK = D
        for cand in range((block_k // 128) * 128, 127, -128):
            if D % cand == 0:                # largest 128-multiple divisor of D
                TK = cand
                break
        n_k = D // TK
        # TODO(synk): support ragged K tiles (masked partial reduction) for D with
        # no multiple-of-128 divisor; for now fall back to shrinking TB.
        while vmem_need(TB, TK, n_k) > vmem_budget_bytes and TB > 8:
            TB = max(8, _round_up(TB // 2, 8))

    grid = (pl.cdiv(B, TB), n_k)
    weight_buffers = 1 if n_k == 1 else None    # resident weight -> single buffer

    vmem_limit = min(int(vmem_need(TB, TK, n_k) * 1.25) + (2 << 20), 48 << 20)
    vmem_limit = max(vmem_limit, 4 << 20)

    out = pl.pallas_call(
        functools.partial(gating_kernel, precision=precision),
        out_shape=jax.ShapeDtypeStruct((B, E_pad), x.dtype),
        grid_spec=pltpu.PrefetchScalarGridSpec(
            num_scalar_prefetch=0,
            grid=grid,
            in_specs=[
                _block_spec((TB, TK), lambda i, k: (i, k)),              # x streamed
                _block_spec((TK, E_pad), lambda i, k: (k, 0), weight_buffers),
                _block_spec((1, E_pad), lambda i, k: (0, 0), 1),         # bias resident
            ],
            out_specs=pl.BlockSpec((TB, E_pad), lambda i, k: (i, 0)),
            scratch_shapes=[pltpu.VMEM((TB, E_pad), jnp.float32)],
        ),
        compiler_params=pltpu.CompilerParams(
            # TODO(synk): on v7x, switch the batch axis to pltpu.CORE_PARALLEL if a
            # profile shows only one TensorCore active on this grid.
            dimension_semantics=("parallel", "arbitrary"),
            vmem_limit_bytes=vmem_limit,
        ),
    )(x, w_t, b2)

    return out[:, :num_experts]


def gating_network(x, weight, bias, **kwargs):
    """One-shot convenience API matching GatingNetwork.forward.

    For repeated calls, hoist prepare_gating_params() out of the hot path and
    call gating_forward() with the prepared parameters directly.
    """
    w_t, b2 = prepare_gating_params(weight, bias)
    return gating_forward(x, w_t, b2, num_experts=weight.shape[0], **kwargs)


if __name__ == "__main__":
    # Small shapes consistent with the module's forward: x is (batch, input_dim).
    batch, input_dim, num_experts = 8, 32, 4

    key = jax.random.PRNGKey(0)
    kx, kw, kb = jax.random.split(key, 3)

    # Deterministic init mimicking nn.Linear's uniform(-1/sqrt(D), 1/sqrt(D)).
    bound = 1.0 / (input_dim ** 0.5)
    x = jax.random.normal(kx, (batch, input_dim), dtype=jnp.float32)
    weight = jax.random.uniform(kw, (num_experts, input_dim),
                                minval=-bound, maxval=bound, dtype=jnp.float32)
    bias = jax.random.uniform(kb, (num_experts,),
                              minval=-bound, maxval=bound, dtype=jnp.float32)

    # One-time parameter prep hoisted out of the jitted forward.
    w_t, b2 = prepare_gating_params(weight, bias)
    out = gating_forward(x, w_t, b2, num_experts=num_experts)
    out = jax.block_until_ready(out)

    # Pure-JAX reference check of the same forward pass.
    ref = x @ weight.T + bias
    assert out.shape == (batch, num_experts)
    assert jnp.allclose(out, ref, atol=1e-5, rtol=1e-5)

    print("KERNEL_OK")
</pallas_src>

<mosaic_0001>
module attributes {stable_mosaic.version = 11 : i64} {
  func.func @gating_kernel(%arg0: i32, %arg1: i32, %arg2: memref<8x32xf32, #tpu.memory_space<vmem>>, %arg3: memref<32x128xf32, #tpu.memory_space<vmem>>, %arg4: memref<1x128xf32, #tpu.memory_space<vmem>>, %arg5: memref<8x128xf32, #tpu.memory_space<vmem>>, %arg6: memref<8x128xf32, #tpu.memory_space<vmem>>) attributes {dimension_semantics = [#tpu.dimension_semantics<parallel>, #tpu.dimension_semantics<arbitrary>], iteration_bounds = array<i64: 1, 1>, scalar_prefetch = 0 : i64, scratch_operands = 1 : i64, tpu.core_type = #tpu.core_type<tc>, window_params = [{transform_indices = @transform_0, window_bounds = array<i64: 8, 32>}, {pipeline_mode = #tpu.pipeline_mode<synchronous>, transform_indices = @transform_1, window_bounds = array<i64: 32, 128>}, {pipeline_mode = #tpu.pipeline_mode<synchronous>, transform_indices = @transform_2, window_bounds = array<i64: 1, 128>}, {transform_indices = @transform_3, window_bounds = array<i64: 8, 128>}]} {
    %c0_i32 = arith.constant 0 : i32
    %0 = arith.cmpi eq, %arg1, %c0_i32 : i32
    %1 = arith.extui %0 : i1 to i32
    %c0_i32_0 = arith.constant 0 : i32
    %2 = arith.cmpi ne, %1, %c0_i32_0 : i32
    scf.if %2 {
      %cst_10 = arith.constant 0.000000e+00 : f32
      %12 = vector.broadcast %cst_10 : f32 to vector<8x128xf32>
      %c0_11 = arith.constant 0 : index
      %c0_12 = arith.constant 0 : index
      %13 = vector.load %arg6[%c0_11, %c0_12] : memref<8x128xf32, #tpu.memory_space<vmem>>, vector<8x128xf32>
      tpu.vector_store %arg6[%c0_11, %c0_12], %12 {strides = array<i32>} : memref<8x128xf32, #tpu.memory_space<vmem>>, vector<8x128xf32>,
    } else {
    }
    %c0 = arith.constant 0 : index
    %c0_1 = arith.constant 0 : index
    %3 = vector.load %arg6[%c0, %c0_1] : memref<8x128xf32, #tpu.memory_space<vmem>>, vector<8x128xf32>
    %c0_2 = arith.constant 0 : index
    %c0_3 = arith.constant 0 : index
    %4 = vector.load %arg2[%c0_2, %c0_3] : memref<8x32xf32, #tpu.memory_space<vmem>>, vector<8x32xf32>
    %c0_4 = arith.constant 0 : index
    %c0_5 = arith.constant 0 : index
    %5 = vector.load %arg3[%c0_4, %c0_5] : memref<32x128xf32, #tpu.memory_space<vmem>>, vector<32x128xf32>
    %cst = arith.constant dense<0.000000e+00> : vector<8x128xf32>
    %6 = tpu.matmul %4, %5, %cst {dimension_numbers = #tpu.dot_dimension_numbers<[1], [0], [0], [1], [0, 0, 1, 1], [], []>} : vector<8x32xf32>, vector<32x128xf32>, vector<8x128xf32> -> vector<8x128xf32>
    %7 = arith.addf %3, %6 : vector<8x128xf32>
    %c0_6 = arith.constant 0 : index
    %c0_7 = arith.constant 0 : index
    %8 = vector.load %arg6[%c0_6, %c0_7] : memref<8x128xf32, #tpu.memory_space<vmem>>, vector<8x128xf32>
    tpu.vector_store %arg6[%c0_6, %c0_7], %7 {strides = array<i32>} : memref<8x128xf32, #tpu.memory_space<vmem>>, vector<8x128xf32>,
    %c0_i32_8 = arith.constant 0 : i32
    %9 = arith.cmpi eq, %arg1, %c0_i32_8 : i32
    %10 = arith.extui %9 : i1 to i32
    %c0_i32_9 = arith.constant 0 : i32
    %11 = arith.cmpi ne, %10, %c0_i32_9 : i32
    scf.if %11 {
      %c0_10 = arith.constant 0 : index
      %c0_11 = arith.constant 0 : index
      %12 = vector.load %arg6[%c0_10, %c0_11] : memref<8x128xf32, #tpu.memory_space<vmem>>, vector<8x128xf32>
      %c0_12 = arith.constant 0 : index
      %c0_13 = arith.constant 0 : index
      %13 = vector.load %arg4[%c0_12, %c0_13] : memref<1x128xf32, #tpu.memory_space<vmem>>, vector<1x128xf32>
      %14 = vector.broadcast %13 : vector<1x128xf32> to vector<8x128xf32>
      %15 = arith.addf %12, %14 : vector<8x128xf32>
      %c0_14 = arith.constant 0 : index
      %c0_15 = arith.constant 0 : index
      %16 = vector.load %arg5[%c0_14, %c0_15] : memref<8x128xf32, #tpu.memory_space<vmem>>, vector<8x128xf32>
      tpu.vector_store %arg5[%c0_14, %c0_15], %15 {strides = array<i32>} : memref<8x128xf32, #tpu.memory_space<vmem>>, vector<8x128xf32>,
    } else {
    }
    return
  }
  func.func @transform_0(%arg0: i32, %arg1: i32) -> (i32, i32) {
    %c0_i32 = arith.constant 0 : i32
    return %arg0, %arg1 : i32, i32
  }
  func.func @transform_1(%arg0: i32, %arg1: i32) -> (i32, i32) {
    %c0_i32 = arith.constant 0 : i32
    %c0_i32_0 = arith.constant 0 : i32
    return %arg1, %c0_i32 : i32, i32
  }
  func.func @transform_2(%arg0: i32, %arg1: i32) -> (i32, i32) {
    %c0_i32 = arith.constant 0 : i32
    %c0_i32_0 = arith.constant 0 : i32
    %c0_i32_1 = arith.constant 0 : i32
    return %c0_i32, %c0_i32_0 : i32, i32
  }
  func.func @transform_3(%arg0: i32, %arg1: i32) -> (i32, i32) {
    %c0_i32 = arith.constant 0 : i32
    %c0_i32_0 = arith.constant 0 : i32
    return %arg0, %c0_i32 : i32, i32
  }
}

</mosaic_0001>

<bundles_post_ra>
// kernel: gating_forward.1
= control target key start
LH: loop header
LB: loop body
LE: loop exit
PB: predicated region body
PF: predicated region fallthrough
CT: control target
= control target key end

     0   :  { %8 = vsyncpa [#allocation4], 0  ;;  %s252_s0 = inlined_call_operand.hbm [shape: f32[8,32], index: 0, kind: input, shape index: {}]   ;;  %s253_s1 = inlined_call_operand.hbm [shape: f32[32,128], index: 1, kind: input, shape index: {}]   ;;  %s254_s2 = inlined_call_operand.vmem [shape: f32[1,128], index: 2, kind: input, shape index: {}]   ;;  %s255_s3 = inlined_call_operand.vmem [shape: f32[8,128], index: 3, kind: output, shape index: {}]  }
   0x1   :  { %9 = vsyncpa [#allocation6], 0  ;;  %s214_s12 = smov [#allocation3]   ;;  %s215_s14 = smov [#allocation5]  }
   0x2   :  { %s16_s13 = sshll.u32 %s214_s12, 4  ;;  %s25_s15 = sshll.u32 %s215_s14, 4  ;;  %s17_s13 = int_to_ptr.vmem [resolvable:$true] %s16_s13  ;;  %s26_s15 = int_to_ptr.vmem [resolvable:$true] %s25_s15 }
   0x3   :  { %s178_s16 = scalar_lea.vmem %s17_s13, 128  ;;  %p183_p1 = scmp.lt.s32.totalorder %s17_s13, %s17_s13 }
   0x4   :  { %p179_p0 = scmp.ne.s32.totalorder %s17_s13, %s178_s16  ;;  %p184_p2 = scmp.lt.s32.totalorder %s178_s16, %s178_s16 }
   0x6   :  { %p185_p3 = por %p184_p2, %p183_p1 }
   0x8   :  { %p186_p4 = pnand %p185_p3, %p179_p0 }
   0xa   :  { %189 = shalt.err (!%p186_p4)
}
   0xb   :  { %19 = dma.hbm_to_vmem [thread:$0]  %s252_s0, 128, %s17_s13, [#allocation4]  }
   0xc   :  { %s198_s19 = scalar_lea.vmem %s26_s15, 512  ;;  %p203_p6 = scmp.lt.s32.totalorder %s26_s15, %s26_s15 }
   0xd   :  { %p199_p5 = scmp.ne.s32.totalorder %s26_s15, %s198_s19  ;;  %p204_p7 = scmp.lt.s32.totalorder %s198_s19, %s198_s19 }
   0xf   :  { %p205_p8 = por %p204_p7, %p203_p6 }
  0x11   :  { %p206_p9 = pnand %p205_p8, %p199_p5 }
  0x13   :  { %209 = shalt.err (!%p206_p9)
}
  0x14   :  { %s216_s20 = smov 128   ;;  %s217_s21 = smov 8  }
  0x15   :  { %31 = dma.hbm_to_vmem [thread:$0]  %s253_s1, 512, %s26_s15, [#allocation6], %s216_s20, %s216_s20, %s217_s21  }
  0x16   :  { %210 = dma.done.wait [#allocation4], 128  }
  0x17   :  { %211 = vsyncadd [#allocation4], 4294967168 }
  0x18   :  { %212 = dma.done.wait [#allocation6], 512  }
  0x19   :  { %213 = vsyncadd [#allocation6], 4294966784  ;;  %v218_v0 = vmov 0.0   ;;  %vm219_vm0 = vmmov 0   ;;  %v50_v1 = vld [vmem:[#allocation5 + $0x18] sm:$0xff]  ;;  %v49_v2 = vld [vmem:[#allocation5 + $0x10] sm:$0xff] }
  0x1a   :  { %153 = vmatprep.subr.mxu0 %v218_v0  ;;  %161 = vmatprep.mubr.msk.f32.mxu0 %vm219_vm0, %v218_v0  ;;  %v48_v3 = vld [vmem:[#allocation5 + $0x8] sm:$0xff]  ;;  %v47_v4 = vld [vmem:[#allocation5] sm:$0xff]  ;;  %v46_v5 = vld [vmem:[#allocation3] sm:$0xff]  ;;  %vm51_vm1 = vcmask 261120  }
  0x1b   :  { %154 = vmatpush3.msra.mxu0 %v50_v1  ;;  %v147_v6 = vld [vmem:[%s254_s2] ss:$0 sm:$0xff] }
  0x1c   :  { %155 = vmatprep.subr.mxu0 %v218_v0 }
  0x1d   :  { %156 = vmatpush3.msra.mxu0 %v49_v2 }
  0x1e   :  { %157 = vmatprep.subr.mxu0 %v218_v0 }
  0x1f   :  { %158 = vmatpush3.msra.mxu0 %v48_v3 }
  0x20   :  { %159 = vmatprep.subr.mxu0 %v218_v0 }
  0x21   :  { %160 = vmatpush3.msra.mxu0 %v47_v4 }
  0x22   :  { %162 = vmatmul.mubr.msk.f32.vlgmr.msra.gmra.mxu0 %vm51_vm1, %v46_v5 }
  0xe2   :  { %v121_v7 = vpop.f32.mrf.mxu0 }
  0xe3   :  { %v138_v8 = vadd.f32 %v147_v6, %v121_v7 }
  0xe4   :  { %v163_v9 = vpop.f32.mrf.mxu0 }
  0xe5   :  { %139 = vst [vmem:[%s255_s3] sm:$0xff] %v138_v8 }
  0xe6   :  { %144 = vsyncpa [#allocation4], 1 }
  0xe7   :  { %145 = vsyncpa [#allocation6], 1 }

</bundles_post_ra>
